<compile_context>
chip_gen: v7x
topology: tpu7x:2x2x1
jax: 0.10.0
libtpu: 0.0.40
codegen_flags: <defaults>
</compile_context>

<pallas_src>
import jax
import jax.numpy as jnp
from jax.experimental import pallas as pl
from jax.experimental.pallas import tpu as pltpu


def p_kernel(z_ref, w1_ref, g1_ref, b1_ref, m1_ref,
             w2_ref, g2_ref, b2_ref, m2_ref,
             w3_ref,
             x_ref, h3_ref):
    eps = 1e-5
    neg_slope = 0.01  # PyTorch LeakyReLU default

    def bn_lrelu_drop(h, gamma, beta, mask2x):
        # BatchNorm1d, training mode: biased batch statistics over the batch axis.
        mean = jnp.mean(h, axis=0, keepdims=True)
        var = jnp.mean(jnp.square(h - mean), axis=0, keepdims=True)
        h = (h - mean) * jax.lax.rsqrt(var + eps) * gamma + beta
        # LeakyReLU(0.01)
        h = jnp.where(h >= 0, h, neg_slope * h)
        # Dropout p=0.5 (training): mask2x is a precomputed {0.0, 2.0} mask, so the
        # keep-select and the 1/(1-p) scale are fused into one multiply.
        return h * mask2x

    # fc1 (no bias) -> bn1 -> leaky -> dropout
    z = z_ref[...].astype(jnp.bfloat16)
    h = jnp.dot(z, w1_ref[...].astype(jnp.bfloat16),
                preferred_element_type=jnp.float32)
    h = bn_lrelu_drop(h, g1_ref[...], b1_ref[...], m1_ref[...])

    # fc2 (no bias) -> bn2 -> leaky -> dropout  => h3
    h = jnp.dot(h.astype(jnp.bfloat16), w2_ref[...].astype(jnp.bfloat16),
                preferred_element_type=jnp.float32)
    h3 = bn_lrelu_drop(h, g2_ref[...], b2_ref[...], m2_ref[...])
    h3_ref[...] = h3

    # fc3 (no bias) => X
    x_ref[...] = jnp.dot(h3.astype(jnp.bfloat16),
                         w3_ref[...].astype(jnp.bfloat16),
                         preferred_element_type=jnp.float32)


def p_forward(z, params, dropout_key):
    n = z.shape[0]
    h_dim = params["w1"].shape[1]
    y_dim = params["w3"].shape[1]

    # Training-mode dropout masks, pre-scaled: keep -> 2.0, drop -> 0.0.
    k1, k2 = jax.random.split(dropout_key)
    m1 = jax.random.bernoulli(k1, 0.5, (n, h_dim)).astype(jnp.float32) * 2.0
    m2 = jax.random.bernoulli(k2, 0.5, (n, h_dim)).astype(jnp.float32) * 2.0

    vmem = pl.BlockSpec(memory_space=pltpu.MemorySpace.VMEM)
    out_shape = (jax.ShapeDtypeStruct((n, y_dim), jnp.float32),   # X
                 jax.ShapeDtypeStruct((n, h_dim), jnp.float32))   # h3
    return pl.pallas_call(
        p_kernel,
        out_shape=out_shape,
        in_specs=[vmem] * 10,
        out_specs=(vmem, vmem),
    )(z,
      params["w1"], params["g1"], params["b1"], m1,
      params["w2"], params["g2"], params["b2"], m2,
      params["w3"])


def init_params(key, z_dim, h_dim, y_dim):
    """Deterministic synthetic init (PyTorch-like uniform fan-in scaling)."""
    ks = jax.random.split(key, 3)

    def lin(k, fan_in, fan_out):
        bound = 1.0 / (fan_in ** 0.5)
        # Stored pre-transposed as [in, out] so the kernel does plain X @ W.
        return jax.random.uniform(k, (fan_in, fan_out), jnp.float32,
                                  minval=-bound, maxval=bound)

    return {
        "w1": lin(ks[0], z_dim, h_dim),
        "w2": lin(ks[1], h_dim, h_dim),
        "w3": lin(ks[2], h_dim, y_dim),
        # BatchNorm affine params (PyTorch defaults: gamma=1, beta=0)
        "g1": jnp.ones((1, h_dim), jnp.float32),
        "b1": jnp.zeros((1, h_dim), jnp.float32),
        "g2": jnp.ones((1, h_dim), jnp.float32),
        "b2": jnp.zeros((1, h_dim), jnp.float32),
    }


if __name__ == "__main__":
    # Small shapes consistent with the module: z [N, Z_dim] -> (X [N, y_dim], h3 [N, h_dim])
    N, Z_DIM, H_DIM, Y_DIM = 8, 16, 32, 24

    key = jax.random.PRNGKey(0)
    kz, kp, kd = jax.random.split(key, 3)

    z = jax.random.normal(kz, (N, Z_DIM), jnp.float32)
    params = init_params(kp, Z_DIM, H_DIM, Y_DIM)

    X, h3 = p_forward(z, params, kd)
    jax.block_until_ready((X, h3))

    assert X.shape == (N, Y_DIM) and h3.shape == (N, H_DIM)
    assert bool(jnp.all(jnp.isfinite(X))) and bool(jnp.all(jnp.isfinite(h3)))
    print("KERNEL_OK")
</pallas_src>

<mosaic_0001>
module attributes {stable_mosaic.version = 11 : i64} {
  func.func @p_kernel(%arg0: memref<8x16xf32, #tpu.memory_space<vmem>>, %arg1: memref<16x32xf32, #tpu.memory_space<vmem>>, %arg2: memref<1x32xf32, #tpu.memory_space<vmem>>, %arg3: memref<1x32xf32, #tpu.memory_space<vmem>>, %arg4: memref<8x32xf32, #tpu.memory_space<vmem>>, %arg5: memref<32x32xf32, #tpu.memory_space<vmem>>, %arg6: memref<1x32xf32, #tpu.memory_space<vmem>>, %arg7: memref<1x32xf32, #tpu.memory_space<vmem>>, %arg8: memref<8x32xf32, #tpu.memory_space<vmem>>, %arg9: memref<32x24xf32, #tpu.memory_space<vmem>>, %arg10: memref<8x24xf32, #tpu.memory_space<vmem>>, %arg11: memref<8x32xf32, #tpu.memory_space<vmem>>) attributes {dimension_semantics = [], scalar_prefetch = 0 : i64, scratch_operands = 0 : i64, tpu.core_type = #tpu.core_type<tc>} {
    %c0 = arith.constant 0 : index
    %c0_0 = arith.constant 0 : index
    %0 = vector.load %arg0[%c0, %c0_0] : memref<8x16xf32, #tpu.memory_space<vmem>>, vector<8x16xf32>
    %1 = arith.truncf %0 : vector<8x16xf32> to vector<8x16xbf16>
    %c0_1 = arith.constant 0 : index
    %c0_2 = arith.constant 0 : index
    %2 = vector.load %arg1[%c0_1, %c0_2] : memref<16x32xf32, #tpu.memory_space<vmem>>, vector<16x32xf32>
    %3 = arith.truncf %2 : vector<16x32xf32> to vector<16x32xbf16>
    %cst = arith.constant dense<0.000000e+00> : vector<8x32xf32>
    %4 = tpu.matmul %1, %3, %cst {dimension_numbers = #tpu.dot_dimension_numbers<[1], [0], [0], [1], [0, 0, 1, 1], [], []>} : vector<8x16xbf16>, vector<16x32xbf16>, vector<8x32xf32> -> vector<8x32xf32>
    %c0_3 = arith.constant 0 : index
    %c0_4 = arith.constant 0 : index
    %5 = vector.load %arg2[%c0_3, %c0_4] : memref<1x32xf32, #tpu.memory_space<vmem>>, vector<1x32xf32>
    %c0_5 = arith.constant 0 : index
    %c0_6 = arith.constant 0 : index
    %6 = vector.load %arg3[%c0_5, %c0_6] : memref<1x32xf32, #tpu.memory_space<vmem>>, vector<1x32xf32>
    %c0_7 = arith.constant 0 : index
    %c0_8 = arith.constant 0 : index
    %7 = vector.load %arg4[%c0_7, %c0_8] : memref<8x32xf32, #tpu.memory_space<vmem>>, vector<8x32xf32>
    %cst_9 = arith.constant dense<0.000000e+00> : vector<32xf32>
    %8 = vector.multi_reduction <add>, %4, %cst_9 [0] : vector<8x32xf32> to vector<32xf32>
    %9 = vector.shape_cast %8 : vector<32xf32> to vector<1x32xf32>
    %cst_10 = arith.constant 8.000000e+00 : f32
    %10 = vector.broadcast %cst_10 : f32 to vector<1x32xf32>
    %11 = arith.divf %9, %10 : vector<1x32xf32>
    %12 = vector.broadcast %11 : vector<1x32xf32> to vector<8x32xf32>
    %13 = arith.subf %4, %12 : vector<8x32xf32>
    %14 = arith.mulf %13, %13 : vector<8x32xf32>
    %cst_11 = arith.constant dense<0.000000e+00> : vector<32xf32>
    %15 = vector.multi_reduction <add>, %14, %cst_11 [0] : vector<8x32xf32> to vector<32xf32>
    %16 = vector.shape_cast %15 : vector<32xf32> to vector<1x32xf32>
    %cst_12 = arith.constant 8.000000e+00 : f32
    %17 = vector.broadcast %cst_12 : f32 to vector<1x32xf32>
    %18 = arith.divf %16, %17 : vector<1x32xf32>
    %19 = vector.broadcast %11 : vector<1x32xf32> to vector<8x32xf32>
    %20 = arith.subf %4, %19 : vector<8x32xf32>
    %cst_13 = arith.constant 9.99999974E-6 : f32
    %21 = vector.broadcast %cst_13 : f32 to vector<1x32xf32>
    %22 = arith.addf %18, %21 : vector<1x32xf32>
    %23 = math.rsqrt %22 : vector<1x32xf32>
    %24 = vector.broadcast %23 : vector<1x32xf32> to vector<8x32xf32>
    %25 = arith.mulf %20, %24 : vector<8x32xf32>
    %26 = vector.broadcast %5 : vector<1x32xf32> to vector<8x32xf32>
    %27 = arith.mulf %25, %26 : vector<8x32xf32>
    %28 = vector.broadcast %6 : vector<1x32xf32> to vector<8x32xf32>
    %29 = arith.addf %27, %28 : vector<8x32xf32>
    %cst_14 = arith.constant 0.000000e+00 : f32
    %30 = vector.broadcast %cst_14 : f32 to vector<8x32xf32>
    %31 = arith.cmpf oge, %29, %30 : vector<8x32xf32>
    %cst_15 = arith.constant 0.00999999977 : f32
    %32 = vector.broadcast %cst_15 : f32 to vector<8x32xf32>
    %33 = arith.mulf %32, %29 : vector<8x32xf32>
    %34 = arith.select %31, %29, %33 : vector<8x32xi1>, vector<8x32xf32>
    %35 = arith.mulf %34, %7 : vector<8x32xf32>
    %36 = arith.truncf %35 : vector<8x32xf32> to vector<8x32xbf16>
    %c0_16 = arith.constant 0 : index
    %c0_17 = arith.constant 0 : index
    %37 = vector.load %arg5[%c0_16, %c0_17] : memref<32x32xf32, #tpu.memory_space<vmem>>, vector<32x32xf32>
    %38 = arith.truncf %37 : vector<32x32xf32> to vector<32x32xbf16>
    %cst_18 = arith.constant dense<0.000000e+00> : vector<8x32xf32>
    %39 = tpu.matmul %36, %38, %cst_18 {dimension_numbers = #tpu.dot_dimension_numbers<[1], [0], [0], [1], [0, 0, 1, 1], [], []>} : vector<8x32xbf16>, vector<32x32xbf16>, vector<8x32xf32> -> vector<8x32xf32>
    %c0_19 = arith.constant 0 : index
    %c0_20 = arith.constant 0 : index
    %40 = vector.load %arg6[%c0_19, %c0_20] : memref<1x32xf32, #tpu.memory_space<vmem>>, vector<1x32xf32>
    %c0_21 = arith.constant 0 : index
    %c0_22 = arith.constant 0 : index
    %41 = vector.load %arg7[%c0_21, %c0_22] : memref<1x32xf32, #tpu.memory_space<vmem>>, vector<1x32xf32>
    %c0_23 = arith.constant 0 : index
    %c0_24 = arith.constant 0 : index
    %42 = vector.load %arg8[%c0_23, %c0_24] : memref<8x32xf32, #tpu.memory_space<vmem>>, vector<8x32xf32>
    %cst_25 = arith.constant dense<0.000000e+00> : vector<32xf32>
    %43 = vector.multi_reduction <add>, %39, %cst_25 [0] : vector<8x32xf32> to vector<32xf32>
    %44 = vector.shape_cast %43 : vector<32xf32> to vector<1x32xf32>
    %cst_26 = arith.constant 8.000000e+00 : f32
    %45 = vector.broadcast %cst_26 : f32 to vector<1x32xf32>
    %46 = arith.divf %44, %45 : vector<1x32xf32>
    %47 = vector.broadcast %46 : vector<1x32xf32> to vector<8x32xf32>
    %48 = arith.subf %39, %47 : vector<8x32xf32>
    %49 = arith.mulf %48, %48 : vector<8x32xf32>
    %cst_27 = arith.constant dense<0.000000e+00> : vector<32xf32>
    %50 = vector.multi_reduction <add>, %49, %cst_27 [0] : vector<8x32xf32> to vector<32xf32>
    %51 = vector.shape_cast %50 : vector<32xf32> to vector<1x32xf32>
    %cst_28 = arith.constant 8.000000e+00 : f32
    %52 = vector.broadcast %cst_28 : f32 to vector<1x32xf32>
    %53 = arith.divf %51, %52 : vector<1x32xf32>
    %54 = vector.broadcast %46 : vector<1x32xf32> to vector<8x32xf32>
    %55 = arith.subf %39, %54 : vector<8x32xf32>
    %cst_29 = arith.constant 9.99999974E-6 : f32
    %56 = vector.broadcast %cst_29 : f32 to vector<1x32xf32>
    %57 = arith.addf %53, %56 : vector<1x32xf32>
    %58 = math.rsqrt %57 : vector<1x32xf32>
    %59 = vector.broadcast %58 : vector<1x32xf32> to vector<8x32xf32>
    %60 = arith.mulf %55, %59 : vector<8x32xf32>
    %61 = vector.broadcast %40 : vector<1x32xf32> to vector<8x32xf32>
    %62 = arith.mulf %60, %61 : vector<8x32xf32>
    %63 = vector.broadcast %41 : vector<1x32xf32> to vector<8x32xf32>
    %64 = arith.addf %62, %63 : vector<8x32xf32>
    %cst_30 = arith.constant 0.000000e+00 : f32
    %65 = vector.broadcast %cst_30 : f32 to vector<8x32xf32>
    %66 = arith.cmpf oge, %64, %65 : vector<8x32xf32>
    %cst_31 = arith.constant 0.00999999977 : f32
    %67 = vector.broadcast %cst_31 : f32 to vector<8x32xf32>
    %68 = arith.mulf %67, %64 : vector<8x32xf32>
    %69 = arith.select %66, %64, %68 : vector<8x32xi1>, vector<8x32xf32>
    %70 = arith.mulf %69, %42 : vector<8x32xf32>
    %c0_32 = arith.constant 0 : index
    %c0_33 = arith.constant 0 : index
    %71 = vector.load %arg11[%c0_32, %c0_33] : memref<8x32xf32, #tpu.memory_space<vmem>>, vector<8x32xf32>
    tpu.vector_store %arg11[%c0_32, %c0_33], %70 {strides = array<i32>} : memref<8x32xf32, #tpu.memory_space<vmem>>, vector<8x32xf32>,
    %72 = arith.truncf %70 : vector<8x32xf32> to vector<8x32xbf16>
    %c0_34 = arith.constant 0 : index
    %c0_35 = arith.constant 0 : index
    %73 = vector.load %arg9[%c0_34, %c0_35] : memref<32x24xf32, #tpu.memory_space<vmem>>, vector<32x24xf32>
    %74 = arith.truncf %73 : vector<32x24xf32> to vector<32x24xbf16>
    %cst_36 = arith.constant dense<0.000000e+00> : vector<8x24xf32>
    %75 = tpu.matmul %72, %74, %cst_36 {dimension_numbers = #tpu.dot_dimension_numbers<[1], [0], [0], [1], [0, 0, 1, 1], [], []>} : vector<8x32xbf16>, vector<32x24xbf16>, vector<8x24xf32> -> vector<8x24xf32>
    %c0_37 = arith.constant 0 : index
    %c0_38 = arith.constant 0 : index
    %76 = vector.load %arg10[%c0_37, %c0_38] : memref<8x24xf32, #tpu.memory_space<vmem>>, vector<8x24xf32>
    tpu.vector_store %arg10[%c0_37, %c0_38], %75 {strides = array<i32>} : memref<8x24xf32, #tpu.memory_space<vmem>>, vector<8x24xf32>,
    return
  }
}

</mosaic_0001>

<bundles_post_ra>
// kernel: tpu_custom_call.1
= control target key start
LH: loop header
LB: loop body
LE: loop exit
PB: predicated region body
PF: predicated region fallthrough
CT: control target
= control target key end

     0   :  { %17 = vsyncpa [#allocation3], 0  ;;  %s693_s0 = inlined_call_operand.vmem [shape: f32[8,16], index: 0, kind: input, shape index: {}]   ;;  %s694_s1 = inlined_call_operand.vmem [shape: f32[16,32], index: 1, kind: input, shape index: {}]   ;;  %s695_s2 = inlined_call_operand.vmem [shape: f32[1,32], index: 2, kind: input, shape index: {}]   ;;  %s696_s3 = inlined_call_operand.vmem [shape: f32[1,32], index: 3, kind: input, shape index: {}]   ;;  %s697_s4 = inlined_call_operand.vmem [shape: f32[8,32], index: 4, kind: input, shape index: {}]   ;;  %s698_s5 = inlined_call_operand.vmem [shape: f32[32,32], index: 5, kind: input, shape index: {}]   ;;  %s699_s6 = inlined_call_operand.hbm [shape: f32[1,32], index: 6, kind: input, shape index: {}]   ;;  %s700_s7 = inlined_call_operand.hbm [shape: f32[1,32], index: 7, kind: input, shape index: {}]   ;;  %s701_s8 = inlined_call_operand.hbm [shape: f32[8,32], index: 8, kind: input, shape index: {}]   ;;  %s702_s9 = inlined_call_operand.vmem [shape: f32[32,24], index: 9, kind: input, shape index: {}]   ;;  %s703_s10 = inlined_call_operand.hbm [shape: f32[8,24], index: 10, kind: output, shape index: {0}]   ;;  %s704_s11 = inlined_call_operand.hbm [shape: f32[8,32], index: 11, kind: output, shape index: {1}]  }
   0x1   :  { %18 = vsyncpa [#allocation6], 0 }
   0x2   :  { %19 = vsyncpa [#allocation4], 0 }
   0x3   :  { %20 = vsyncpa [#allocation10], 0  ;;  %s509_s17 = smov [#allocation5]   ;;  %s510_s19 = smov [#allocation2]  }
   0x4   :  { %s49_s18 = sshll.u32 %s509_s17, 4  ;;  %s39_s20 = sshll.u32 %s510_s19, 4  ;;  %s50_s18 = int_to_ptr.vmem [resolvable:$true] %s49_s18  ;;  %s40_s20 = int_to_ptr.vmem [resolvable:$true] %s39_s20 }
   0x5   :  { %s391_s23 = scalar_lea.hbm %s700_s7, 16 }
   0x6   :  { %p392_p0 = scmp.ne.s32.totalorder %s700_s7, %s391_s23  ;;  %p395_p1 = scmp.lt.u32.totalorder %s391_s23, %s700_s7 }
   0x8   :  { %p397_p2 = pnand %p395_p1, %p392_p0 }
   0xa   :  { %400 = shalt.err (!%p397_p2)
}
   0xb   :  { %s401_s28 = scalar_lea.vmem %s50_s18, 16  ;;  %s405_s29 = scalar_lea.vmem %s50_s18, 32 }
   0xc   :  { %p402_p3 = scmp.ne.s32.totalorder %s50_s18, %s401_s28  ;;  %p406_p4 = scmp.lt.s32.totalorder %s50_s18, %s50_s18 }
   0xd   :  { %p407_p5 = scmp.lt.s32.totalorder %s405_s29, %s401_s28 }
   0xf   :  { %p408_p6 = por %p407_p5, %p406_p4 }
  0x11   :  { %p409_p7 = pnand %p408_p6, %p402_p3 }
  0x13   :  { %412 = shalt.err (!%p409_p7)
}
  0x14   :  { %52 = dma.hbm_to_vmem [thread:$0]  %s700_s7, 16, %s50_s18, [#allocation6]  }
  0x15   :  { %s413_s15 = scalar_lea.hbm %s699_s6, 16 }
  0x16   :  { %p414_p8 = scmp.ne.s32.totalorder %s699_s6, %s413_s15  ;;  %p417_p9 = scmp.lt.u32.totalorder %s413_s15, %s699_s6 }
  0x18   :  { %p419_p10 = pnand %p417_p9, %p414_p8 }
  0x1a   :  { %422 = shalt.err (!%p419_p10)
}
  0x1b   :  { %s423_s22 = scalar_lea.vmem %s40_s20, 16  ;;  %s427_s23 = scalar_lea.vmem %s40_s20, 32 }
  0x1c   :  { %p424_p11 = scmp.ne.s32.totalorder %s40_s20, %s423_s22  ;;  %p428_p12 = scmp.lt.s32.totalorder %s40_s20, %s40_s20 }
  0x1d   :  { %p429_p13 = scmp.lt.s32.totalorder %s427_s23, %s423_s22 }
  0x1f   :  { %p430_p0 = por %p429_p13, %p428_p12 }
  0x21   :  { %p431_p1 = pnand %p430_p0, %p424_p11 }
  0x23   :  { %434 = shalt.err (!%p431_p1)
}
  0x24   :  { %42 = dma.hbm_to_vmem [thread:$0]  %s699_s6, 16, %s40_s20, [#allocation3]  }
  0x25   :  { %s511_s24 = smov [#allocation7]   ;;  %s435_s28 = scalar_lea.hbm %s701_s8, 128 }
  0x26   :  { %s59_s25 = sshll.u32 %s511_s24, 4  ;;  %p436_p2 = scmp.ne.s32.totalorder %s701_s8, %s435_s28  ;;  %s60_s25 = int_to_ptr.vmem [resolvable:$true] %s59_s25 }
  0x27   :  { %p439_p3 = scmp.lt.u32.totalorder %s435_s28, %s701_s8 }
  0x29   :  { %p441_p4 = pnand %p439_p3, %p436_p2 }
  0x2b   :  { %444 = shalt.err (!%p441_p4)
}
  0x2c   :  { %s445_s14 = scalar_lea.vmem %s60_s25, 128  ;;  %p450_p6 = scmp.lt.s32.totalorder %s60_s25, %s60_s25 }
  0x2d   :  { %p446_p5 = scmp.ne.s32.totalorder %s60_s25, %s445_s14  ;;  %p451_p7 = scmp.lt.s32.totalorder %s445_s14, %s445_s14 }
  0x2f   :  { %p452_p8 = por %p451_p7, %p450_p6 }
  0x31   :  { %p453_p9 = pnand %p452_p8, %p446_p5 }
  0x33   :  { %456 = shalt.err (!%p453_p9)
}
  0x34   :  { %62 = dma.hbm_to_vmem [thread:$0]  %s701_s8, 128, %s60_s25, [#allocation6]  }
  0x35   :  { %501 = dma.done.wait [#allocation3], 16  }
  0x36   :  { %502 = vsyncadd [#allocation3], 4294967280 }
  0x37   :  { %503 = dma.done.wait [#allocation6], 144  }
  0x38   :  { %504 = vsyncadd [#allocation6], 4294967152  ;;  %v512_v0 = vmov 0.0   ;;  %vm513_vm0 = vmmov 0   ;;  %v77_v1 = vld [vmem:[%s694_s1] sm:$0xff]  ;;  %v78_v2 = vld [vmem:[%s694_s1 + $0x8] sm:$0xff] }
  0x39   :  { %358 = vmatprep.subr.bf16.mxu0 %v512_v0  ;;  %360 = vmatprep.mubr.msk.bf16.mxu0 %vm513_vm0, %v512_v0  ;;  %v75_v3 = vld [vmem:[%s693_s0] sm:$0xff]  ;;  %v79_v4 = vpack.c.bf16 %v78_v2, %v77_v1  ;;  %vm80_vm1 = vcmask 130048   ;;  %v170_v7 = vld [vmem:[%s698_s5 + $0x8] sm:$0xff]  ;;  %v171_v9 = vld [vmem:[%s698_s5 + $0x10] sm:$0xff]  ;;  %vm127_vm2 = vcmask 261120  }
  0x3a   :  { %364 = vmatprep.subr.bf16.mxu1 %v512_v0  ;;  %368 = vmatprep.mubr.msk.bf16.mxu1 %vm513_vm0, %v512_v0  ;;  %v76_v5 = vpack.c.bf16 %v75_v3, %v75_v3  ;;  %v169_v6 = vld [vmem:[%s698_s5] sm:$0xff]  ;;  %v172_v10 = vld [vmem:[%s698_s5 + $0x18] sm:$0xff]  ;;  %v263_v47 = vld [vmem:[%s702_s9 + $0x8] sm:$0xff] }
  0x3b   :  { %359 = vmatpush3.bf16.msra.mxu0 %v79_v4  ;;  %v173_v8 = vpack.c.bf16 %v170_v7, %v169_v6  ;;  %v174_v11 = vpack.c.bf16 %v172_v10, %v171_v9  ;;  %v344_v36 = vld [vmem:[%s695_s2] ss:$0 sm:$0xff]  ;;  %v264_v49 = vld [vmem:[%s702_s9 + $0x10] sm:$0xff]  ;;  %v265_v50 = vld [vmem:[%s702_s9 + $0x18] sm:$0xff] }
  0x3c   :  { %372 = vmatprep.subr.bf16.mxu0 %v512_v0  ;;  %v345_v38 = vld [vmem:[%s696_s3] ss:$0 sm:$0xff]  ;;  %v267_v51 = vpack.c.bf16 %v265_v50, %v264_v49 }
  0x3d   :  { %365 = vmatpush3.bf16.msra.mxu1 %v173_v8  ;;  %v126_v42 = vld [vmem:[%s697_s4] sm:$0xff] }
  0x3e   :  { %361 = vmatmul.mubr.msk.bf16.vlgmr.msra.gmra.mrb[0].mxu0 %vm80_vm1, %v76_v5  ;;  %366 = vmatprep.subr.bf16.mxu1 %v512_v0  ;;  %v262_v46 = vld [vmem:[%s702_s9] sm:$0xff]  ;;  %s514_s9 = smov [#allocation9]  }
  0x3f   :  { %376 = vmatprep.mubr.msk.bf16.mxu0 %vm513_vm0, %v512_v0  ;;  %v266_v48 = vpack.c.bf16 %v263_v47, %v262_v46  ;;  %s329_s15 = sshll.u32 %s514_s9, 4  ;;  %s330_s15 = int_to_ptr.vmem [resolvable:$true] %s329_s15 }
  0x40   :  { %s457_s16 = scalar_lea.vmem %s330_s15, 128  ;;  %p462_p11 = scmp.lt.s32.totalorder %s330_s15, %s330_s15 }
  0x41   :  { %367 = vmatpush3.bf16.msra.mxu1 %v174_v11  ;;  %373 = vmatpush3.bf16.msra.mxu0 %v266_v48  ;;  %p458_p10 = scmp.ne.s32.totalorder %s330_s15, %s457_s16  ;;  %p463_p12 = scmp.lt.s32.totalorder %s457_s16, %s457_s16 }
  0x42   :  { %374 = vmatprep.subr.bf16.mxu0 %v512_v0 }
  0x43   :  { %p464_p13 = por %p463_p12, %p462_p11 }
  0x45   :  { %375 = vmatpush3.bf16.msra.mxu0 %v267_v51  ;;  %p465_p0 = pnand %p464_p13, %p458_p10 }
 0x111   :  { %v118_v12 = vpop.f32.mrb[0].mxu0 }
 0x112   :  { %v128_v13 = vsel %vm127_vm2, %v118_v12, 0.0  ;;  %v362_v14 = vpop.f32.mrb[1].mxu0 }
 0x113   :  { %v129_v15 = vrot.slane %v128_v13, 4  ;;  %v121_v16 = vpop.f32.mrb[2].mxu0  ;;  %v348_v14 = vld [vmem:[#allocation5] ss:$0 sm:$0xff] }
 0x114   :  { %v363_v17 = vpop.f32.mrb[3].mxu0 }
 0x115   :  { %v130_v18 = vadd.f32 %v129_v15, %v128_v13  ;;  %v220_v17 = vld [vmem:[#allocation7] sm:$0xff] }
 0x117   :  { %v131_v19 = vrot.slane %v130_v18, 2 }
 0x119   :  { %v132_v20 = vadd.f32 %v131_v19, %v130_v18 }
 0x11b   :  { %v133_v21 = vrot.slane %v132_v20, 1 }
 0x11d   :  { %v134_v22 = vadd.f32 %v133_v21, %v132_v20 }
 0x11f   :  { %v136_v23 = vmul.f32 0.125, %v134_v22 }
 0x121   :  { %v137_v24 = vsub.f32 %v118_v12, %v136_v23  ;;  %v347_v12 = vld [vmem:[#allocation2] ss:$0 sm:$0xff] }
 0x123   :  { %v138_v25 = vmul.f32 %v137_v24, %v137_v24 }
 0x125   :  { %v139_v26 = vsel %vm127_vm2, %v138_v25, 0.0 }
 0x126   :  { %v140_v27 = vrot.slane %v139_v26, 4 }
 0x128   :  { %v141_v28 = vadd.f32 %v140_v27, %v139_v26 }
 0x12a   :  { %v142_v29 = vrot.slane %v141_v28, 2 }
 0x12c   :  { %v143_v30 = vadd.f32 %v142_v29, %v141_v28 }
 0x12e   :  { %v144_v31 = vrot.slane %v143_v30, 1 }
 0x130   :  { %v145_v32 = vadd.f32 %v144_v31, %v143_v30 }
 0x132   :  { %v146_v33 = vmul.f32 0.125, %v145_v32 }
 0x134   :  { %v147_v34 = vadd.f32 1e-05, %v146_v33 }
 0x136   :  { %387 = vrsqrt.f32 %v147_v34 }
 0x140   :  { %v388_v35 = vpop.eup %387 }
 0x141   :  { %v149_v37 = vmul.f32 %v388_v35, %v137_v24 }
 0x143   :  { %v156_v39 = vmul.f32 %v344_v36, %v149_v37 }
 0x145   :  { %v163_v40 = vadd.f32 %v345_v38, %v156_v39 }
 0x147   :  { %v165_v41 = vmul.f32 0.01, %v163_v40  ;;  %vm164_vm3 = vcmp.ge.f32.partialorder %v163_v40, 0.0 }
 0x149   :  { %v166_v43 = vsel %vm164_vm3, %v163_v40, %v165_v41 }
 0x14a   :  { %v167_v44 = vmul.f32 %v166_v43, %v126_v42 }
 0x14c   :  { %v168_v45 = vpack.c.bf16 %v167_v44, %v167_v44 }
 0x14e   :  { %369 = vmatmul.mubr.msk.bf16.vlgmr.msra.gmra.mrb[0].mxu1 %vm127_vm2, %v168_v45 }
 0x221   :  { %v212_v52 = vpop.f32.mrb[0].mxu1 }
 0x222   :  { %v221_v53 = vsel %vm127_vm2, %v212_v52, 0.0  ;;  %v370_v54 = vpop.f32.mrb[1].mxu1 }
 0x223   :  { %v222_v55 = vrot.slane %v221_v53, 4  ;;  %v215_v56 = vpop.f32.mrb[2].mxu1 }
 0x224   :  { %v371_v57 = vpop.f32.mrb[3].mxu1 }
 0x225   :  { %v223_v58 = vadd.f32 %v222_v55, %v221_v53 }
 0x227   :  { %v224_v59 = vrot.slane %v223_v58, 2 }
 0x229   :  { %v225_v60 = vadd.f32 %v224_v59, %v223_v58 }
 0x22b   :  { %v226_v61 = vrot.slane %v225_v60, 1 }
 0x22d   :  { %v227_v62 = vadd.f32 %v226_v61, %v225_v60 }
 0x22f   :  { %v228_v63 = vmul.f32 0.125, %v227_v62 }
 0x231   :  { %v229_v0 = vsub.f32 %v212_v52, %v228_v63 }
 0x233   :  { %v230_v1 = vmul.f32 %v229_v0, %v229_v0 }
 0x235   :  { %v231_v2 = vsel %vm127_vm2, %v230_v1, 0.0 }
 0x236   :  { %v232_v3 = vrot.slane %v231_v2, 4 }
 0x238   :  { %v233_v4 = vadd.f32 %v232_v3, %v231_v2 }
 0x23a   :  { %v234_v5 = vrot.slane %v233_v4, 2 }
 0x23c   :  { %v235_v6 = vadd.f32 %v234_v5, %v233_v4 }
 0x23e   :  { %v236_v7 = vrot.slane %v235_v6, 1 }
 0x240   :  { %v237_v8 = vadd.f32 %v236_v7, %v235_v6 }
 0x242   :  { %v238_v9 = vmul.f32 0.125, %v237_v8 }
 0x244   :  { %v239_v10 = vadd.f32 1e-05, %v238_v9 }
 0x246   :  { %389 = vrsqrt.f32 %v239_v10 }
 0x250   :  { %v390_v11 = vpop.eup %389 }
 0x251   :  { %v241_v13 = vmul.f32 %v390_v11, %v229_v0 }
 0x253   :  { %v248_v15 = vmul.f32 %v347_v12, %v241_v13 }
 0x255   :  { %v255_v16 = vadd.f32 %v348_v14, %v248_v15 }
 0x257   :  { %vm256_vm4 = vcmp.ge.f32.partialorder %v255_v16, 0.0  ;;  %v257_v18 = vmul.f32 0.01, %v255_v16 }
 0x259   :  { %v258_v19 = vsel %vm256_vm4, %v255_v16, %v257_v18 }
 0x25a   :  { %v259_v20 = vmul.f32 %v258_v19, %v220_v17 }
 0x25c   :  { %260 = vst.msk [vmem:[#allocation9] sm:$0xff] %vm127_vm2, %v259_v20  ;;  %v261_v21 = vpack.c.bf16 %v259_v20, %v259_v20 }
 0x25e   :  { %377 = vmatmul.mubr.msk.bf16.vlgmr.msra.gmra.mrb[4].mxu0 %vm127_vm2, %v261_v21 }
 0x25f   :  { %468 = shalt.err (!%p465_p0)
}
 0x260   :  { %s469_s19 = scalar_lea.hbm %s704_s11, 128 }
 0x261   :  { %p470_p1 = scmp.ne.s32.totalorder %s704_s11, %s469_s19  ;;  %p473_p2 = scmp.lt.u32.totalorder %s469_s19, %s704_s11 }
 0x263   :  { %p475_p3 = pnand %p473_p2, %p470_p1 }
 0x265   :  { %478 = shalt.err (!%p475_p3)
}
 0x266   :  { %332 = dma.vmem_to_hbm [thread:$0]  %s330_s15, 128, %s704_s11, [#allocation10]   ;;  %vm311_vm5 = vcmask 195584  }
 0x267   :  { %s515_s1 = smov [#allocation8]  }
 0x268   :  { %s319_s24 = sshll.u32 %s515_s1, 4  ;;  %s320_s24 = int_to_ptr.vmem [resolvable:$true] %s319_s24 }
 0x269   :  { %s479_s25 = scalar_lea.vmem %s320_s24, 128  ;;  %p484_p5 = scmp.lt.s32.totalorder %s320_s24, %s320_s24 }
 0x26a   :  { %p480_p4 = scmp.ne.s32.totalorder %s320_s24, %s479_s25  ;;  %p485_p6 = scmp.lt.s32.totalorder %s479_s25, %s479_s25 }
 0x26c   :  { %p486_p7 = por %p485_p6, %p484_p5 }
 0x26e   :  { %p487_p8 = pnand %p486_p7, %p480_p4 }
 0x331   :  { %v305_v22 = vpop.f32.mrb[4].mxu0 }
 0x332   :  { %v378_v23 = vpop.f32.mrb[5].mxu0  ;;  %312 = vst.msk [vmem:[#allocation8] sm:$0xff] %vm311_vm5, %v305_v22 }
 0x333   :  { %v308_v24 = vpop.f32.mrb[6].mxu0 }
 0x334   :  { %490 = shalt.err (!%p487_p8)
}
 0x335   :  { %s491_s27 = scalar_lea.hbm %s703_s10, 128 }
 0x336   :  { %p492_p9 = scmp.ne.s32.totalorder %s703_s10, %s491_s27  ;;  %p495_p10 = scmp.lt.u32.totalorder %s491_s27, %s703_s10 }
 0x338   :  { %p497_p11 = pnand %p495_p10, %p492_p9 }
 0x33a   :  { %500 = shalt.err (!%p497_p11)
}
 0x33b   :  { %322 = dma.vmem_to_hbm [thread:$0]  %s320_s24, 128, %s703_s10, [#allocation4]   ;;  %v379_v25 = vpop.f32.mrb[7].mxu0 }
 0x33c   :  { %505 = dma.done.wait [#allocation4], 128  }
 0x33d   :  { %506 = vsyncadd [#allocation4], 4294967168 }
 0x33e   :  { %507 = dma.done.wait [#allocation10], 128  }
 0x33f   :  { %508 = vsyncadd [#allocation10], 4294967168 }
 0x340   :  { %339 = vsyncpa [#allocation3], 1 }
 0x341   :  { %340 = vsyncpa [#allocation6], 1 }
 0x342   :  { %341 = vsyncpa [#allocation4], 1 }
 0x343   :  { %342 = vsyncpa [#allocation10], 1 }

</bundles_post_ra>
